<compile_context>
chip_gen: v5e
topology: v5e:2x2
jax: 0.10.0
libtpu: 0.0.40
codegen_flags: <defaults>
</compile_context>

<pallas_src>
import jax
import jax.numpy as jnp
from jax.experimental import pallas as pl
from jax.experimental.pallas import tpu as pltpu


def _round_up(x, m):
    return (x + m - 1) // m * m


def _residual_linear_kernel(x_ref, wt_ref, b_ref, xr_ref, o_ref, acc_ref):
    # x_ref:  (tm, tk)  rows x contraction slice (matmul operand)
    # wt_ref: (tk, tn)  pre-transposed weight tile (W.T) -> MXU consumes directly
    # b_ref:  (1, tn)   bias slice
    # xr_ref: (tm, tn)  residual slice of x aligned with the output tile
    # o_ref:  (tm, tn)  output tile
    # acc_ref:(tm, tn)  f32 accumulator, resident across the k (contraction) axis
    k = pl.program_id(2)

    @pl.when(k == 0)
    def _init():
        acc_ref[...] = jnp.zeros_like(acc_ref)

    acc_ref[...] += jnp.dot(x_ref[...], wt_ref[...],
                            preferred_element_type=jnp.float32)

    @pl.when(k == pl.num_programs(2) - 1)
    def _finalize():
        out = (acc_ref[...]
               + b_ref[...].astype(jnp.float32)
               + xr_ref[...].astype(jnp.float32))
        o_ref[...] = out.astype(o_ref.dtype)


def residual_linear(x, w, b, *, tm_max=256, compute_dtype=None):
    """out = x + x @ w.T + b  (Residual(nn.Linear(D, D)) forward).

    `w` uses torch.nn.Linear layout (out_features, in_features) = (D, D).
    `compute_dtype` (e.g. jnp.bfloat16) optionally casts the MXU operands;
    accumulation stays f32 and the residual add uses the original x.
    """
    N, D = x.shape
    assert w.shape == (D, D)
    assert b.shape == (D,)
    out_dtype = x.dtype

    # ---- one-time wrapper-side layout plumbing (outside the grid loop) ----
    wt = jnp.asarray(w).T                 # contiguous W.T; no in-kernel transpose
    b2 = jnp.asarray(b).reshape(1, D)

    # Lane-dense padding of the feature dim; row tile is a multiple of 8.
    Dp = _round_up(D, 128)
    tm = min(_round_up(tm_max, 8), _round_up(N, 8))
    Np = _round_up(N, tm)
    # Largest tile in {512, 256, 128} dividing the padded feature dim.
    tn = tk = next(t for t in (512, 256, 128) if Dp % t == 0)

    x_p = x
    if (Np, Dp) != (N, D):
        x_p = jnp.pad(x, ((0, Np - N), (0, Dp - D)))
    if Dp != D:
        wt = jnp.pad(wt, ((0, Dp - D), (0, Dp - D)))
        b2 = jnp.pad(b2, ((0, 0), (0, Dp - D)))

    x_mm = x_p if compute_dtype is None else x_p.astype(compute_dtype)
    wt_mm = wt if compute_dtype is None else wt.astype(compute_dtype)

    grid = (Np // tm, Dp // tn, Dp // tk)

    # Explicit VMEM budget: double-buffered tiles + f32 accumulator, capped so
    # the same config compiles on v7x's 64 MiB VMEM.
    mm_it = jnp.dtype(x_mm.dtype).itemsize
    res_it = jnp.dtype(x_p.dtype).itemsize
    out_it = jnp.dtype(out_dtype).itemsize
    tile_vmem = (2 * (tm * tk + tk * tn + tn) * mm_it
                 + 2 * tm * tn * res_it
                 + 2 * tm * tn * out_it
                 + tm * tn * 4)
    vmem_limit = int(min(max(3 * tile_vmem, 32 * 2**20), 48 * 2**20))

    cost = pl.CostEstimate(
        flops=2 * N * D * D + 2 * N * D,
        transcendentals=0,
        bytes_accessed=(2 * x.size * x.dtype.itemsize      # x read twice (mm + residual)
                        + w.size * w.dtype.itemsize
                        + b.size * b.dtype.itemsize
                        + N * D * out_it),
    )

    out_p = pl.pallas_call(
        _residual_linear_kernel,
        out_shape=jax.ShapeDtypeStruct((Np, Dp), out_dtype),
        grid_spec=pltpu.PrefetchScalarGridSpec(
            num_scalar_prefetch=0,
            grid=grid,
            in_specs=[
                pl.BlockSpec((tm, tk), lambda i, j, k: (i, k)),   # x (matmul)
                pl.BlockSpec((tk, tn), lambda i, j, k: (k, j)),   # W.T tile
                pl.BlockSpec((1, tn), lambda i, j, k: (0, j)),    # bias row
                pl.BlockSpec((tm, tn), lambda i, j, k: (i, j)),   # x (residual)
            ],
            out_specs=pl.BlockSpec((tm, tn), lambda i, j, k: (i, j)),
            scratch_shapes=[pltpu.VMEM((tm, tn), jnp.float32)],
        ),
        compiler_params=pltpu.CompilerParams(
            dimension_semantics=("parallel", "parallel", "arbitrary"),
            vmem_limit_bytes=vmem_limit,
        ),
        cost_estimate=cost,
    )(x_mm, wt_mm, b2, x_p)

    if (Np, Dp) != (N, D):
        out_p = out_p[:N, :D]
    return out_p


if __name__ == "__main__":
    key = jax.random.PRNGKey(0)
    k_x, k_w, k_b = jax.random.split(key, 3)

    batch, hidden = 8, 32  # small shapes consistent with Residual(Linear(D, D))
    x = jax.random.normal(k_x, (batch, hidden), dtype=jnp.float32)
    # torch.nn.Linear-shaped parameters: (out_features, in_features) / (out_features,)
    w = jax.random.normal(k_w, (hidden, hidden), dtype=jnp.float32) * 0.1
    b = jax.random.normal(k_b, (hidden,), dtype=jnp.float32) * 0.1

    out = residual_linear(x, w, b)
    jax.block_until_ready(out)

    # Reference: x + Linear(x)
    ref = x + (x @ w.T + b)
    assert out.shape == ref.shape
    assert jnp.allclose(out, ref, atol=1e-5, rtol=1e-5), "mismatch vs reference"

    print("KERNEL_OK")
</pallas_src>

<mosaic_0001>
module attributes {stable_mosaic.version = 11 : i64} {
  func.func @_residual_linear_kernel(%arg0: i32, %arg1: i32, %arg2: i32, %arg3: memref<8x128xf32, #tpu.memory_space<vmem>>, %arg4: memref<128x128xf32, #tpu.memory_space<vmem>>, %arg5: memref<1x128xf32, #tpu.memory_space<vmem>>, %arg6: memref<8x128xf32, #tpu.memory_space<vmem>>, %arg7: memref<8x128xf32, #tpu.memory_space<vmem>>, %arg8: memref<8x128xf32, #tpu.memory_space<vmem>>) attributes {dimension_semantics = [#tpu.dimension_semantics<parallel>, #tpu.dimension_semantics<parallel>, #tpu.dimension_semantics<arbitrary>], iteration_bounds = array<i64: 1, 1, 1>, scalar_prefetch = 0 : i64, scratch_operands = 1 : i64, tpu.core_type = #tpu.core_type<tc>, window_params = [{transform_indices = @transform_0, window_bounds = array<i64: 8, 128>}, {transform_indices = @transform_1, window_bounds = array<i64: 128, 128>}, {transform_indices = @transform_2, window_bounds = array<i64: 1, 128>}, {transform_indices = @transform_3, window_bounds = array<i64: 8, 128>}, {transform_indices = @transform_4, window_bounds = array<i64: 8, 128>}]} {
    %c0_i32 = arith.constant 0 : i32
    %0 = arith.cmpi eq, %arg2, %c0_i32 : i32
    %1 = arith.extui %0 : i1 to i32
    %c0_i32_0 = arith.constant 0 : i32
    %2 = arith.cmpi ne, %1, %c0_i32_0 : i32
    scf.if %2 {
      %cst_10 = arith.constant 0.000000e+00 : f32
      %12 = vector.broadcast %cst_10 : f32 to vector<8x128xf32>
      %c0_11 = arith.constant 0 : index
      %c0_12 = arith.constant 0 : index
      %13 = vector.load %arg8[%c0_11, %c0_12] : memref<8x128xf32, #tpu.memory_space<vmem>>, vector<8x128xf32>
      tpu.vector_store %arg8[%c0_11, %c0_12], %12 {strides = array<i32>} : memref<8x128xf32, #tpu.memory_space<vmem>>, vector<8x128xf32>,
    } else {
    }
    %c0 = arith.constant 0 : index
    %c0_1 = arith.constant 0 : index
    %3 = vector.load %arg8[%c0, %c0_1] : memref<8x128xf32, #tpu.memory_space<vmem>>, vector<8x128xf32>
    %c0_2 = arith.constant 0 : index
    %c0_3 = arith.constant 0 : index
    %4 = vector.load %arg3[%c0_2, %c0_3] : memref<8x128xf32, #tpu.memory_space<vmem>>, vector<8x128xf32>
    %c0_4 = arith.constant 0 : index
    %c0_5 = arith.constant 0 : index
    %5 = vector.load %arg4[%c0_4, %c0_5] : memref<128x128xf32, #tpu.memory_space<vmem>>, vector<128x128xf32>
    %cst = arith.constant dense<0.000000e+00> : vector<8x128xf32>
    %6 = tpu.matmul %4, %5, %cst {dimension_numbers = #tpu.dot_dimension_numbers<[1], [0], [0], [1], [0, 0, 1, 1], [], []>} : vector<8x128xf32>, vector<128x128xf32>, vector<8x128xf32> -> vector<8x128xf32>
    %7 = arith.addf %3, %6 : vector<8x128xf32>
    %c0_6 = arith.constant 0 : index
    %c0_7 = arith.constant 0 : index
    %8 = vector.load %arg8[%c0_6, %c0_7] : memref<8x128xf32, #tpu.memory_space<vmem>>, vector<8x128xf32>
    tpu.vector_store %arg8[%c0_6, %c0_7], %7 {strides = array<i32>} : memref<8x128xf32, #tpu.memory_space<vmem>>, vector<8x128xf32>,
    %c0_i32_8 = arith.constant 0 : i32
    %9 = arith.cmpi eq, %arg2, %c0_i32_8 : i32
    %10 = arith.extui %9 : i1 to i32
    %c0_i32_9 = arith.constant 0 : i32
    %11 = arith.cmpi ne, %10, %c0_i32_9 : i32
    scf.if %11 {
      %c0_10 = arith.constant 0 : index
      %c0_11 = arith.constant 0 : index
      %12 = vector.load %arg8[%c0_10, %c0_11] : memref<8x128xf32, #tpu.memory_space<vmem>>, vector<8x128xf32>
      %c0_12 = arith.constant 0 : index
      %c0_13 = arith.constant 0 : index
      %13 = vector.load %arg5[%c0_12, %c0_13] : memref<1x128xf32, #tpu.memory_space<vmem>>, vector<1x128xf32>
      %14 = vector.broadcast %13 : vector<1x128xf32> to vector<8x128xf32>
      %15 = arith.addf %12, %14 : vector<8x128xf32>
      %c0_14 = arith.constant 0 : index
      %c0_15 = arith.constant 0 : index
      %16 = vector.load %arg6[%c0_14, %c0_15] : memref<8x128xf32, #tpu.memory_space<vmem>>, vector<8x128xf32>
      %17 = arith.addf %15, %16 : vector<8x128xf32>
      %c0_16 = arith.constant 0 : index
      %c0_17 = arith.constant 0 : index
      %18 = vector.load %arg7[%c0_16, %c0_17] : memref<8x128xf32, #tpu.memory_space<vmem>>, vector<8x128xf32>
      tpu.vector_store %arg7[%c0_16, %c0_17], %17 {strides = array<i32>} : memref<8x128xf32, #tpu.memory_space<vmem>>, vector<8x128xf32>,
    } else {
    }
    return
  }
  func.func @transform_0(%arg0: i32, %arg1: i32, %arg2: i32) -> (i32, i32) {
    %c0_i32 = arith.constant 0 : i32
    return %arg0, %arg2 : i32, i32
  }
  func.func @transform_1(%arg0: i32, %arg1: i32, %arg2: i32) -> (i32, i32) {
    %c0_i32 = arith.constant 0 : i32
    return %arg2, %arg1 : i32, i32
  }
  func.func @transform_2(%arg0: i32, %arg1: i32, %arg2: i32) -> (i32, i32) {
    %c0_i32 = arith.constant 0 : i32
    %c0_i32_0 = arith.constant 0 : i32
    return %c0_i32, %arg1 : i32, i32
  }
  func.func @transform_3(%arg0: i32, %arg1: i32, %arg2: i32) -> (i32, i32) {
    %c0_i32 = arith.constant 0 : i32
    return %arg0, %arg1 : i32, i32
  }
  func.func @transform_4(%arg0: i32, %arg1: i32, %arg2: i32) -> (i32, i32) {
    %c0_i32 = arith.constant 0 : i32
    return %arg0, %arg1 : i32, i32
  }
}

</mosaic_0001>

<bundles_post_ra>
// kernel: tpu_custom_call.1
= control target key start
LH: loop header
LB: loop body
LE: loop exit
PB: predicated region body
PF: predicated region fallthrough
CT: control target
= control target key end

     0   :  { %9 = vsyncpa [#allocation4], 0  ;;  %s291_s0 = inlined_call_operand.hbm [shape: f32[8,128], index: 0, kind: input, shape index: {}]   ;;  %s292_s1 = inlined_call_operand.hbm [shape: f32[128,128], index: 1, kind: input, shape index: {}]   ;;  %s293_s2 = inlined_call_operand.vmem [shape: f32[1,128], index: 2, kind: input, shape index: {}]   ;;  %s294_s3 = inlined_call_operand.hbm [shape: f32[8,128], index: 3, kind: input, shape index: {}]   ;;  %s295_s4 = inlined_call_operand.hbm [shape: f32[8,128], index: 4, kind: output, shape index: {}]  }
   0x1   :  { %10 = vsyncpa [#allocation7], 0  ;;  %s27_s17 = sshll.u32 %s292_s1, 4  ;;  %s28_s17 = int_to_ptr.hbm [resolvable:$true] %s27_s17 }
   0x2   :  { %11 = vsyncpa [#allocation5], 0  ;;  %s245_s18 = smov [#allocation6]   ;;  %s17_s22 = sshll.u32 %s291_s0, 4  ;;  %s18_s22 = int_to_ptr.hbm [resolvable:$true] %s17_s22 }
   0x3   :  { %s29_s19 = sshll.u32 %s245_s18, 4  ;;  %s246_s23 = smov 128   ;;  %s30_s19 = int_to_ptr.vmem [resolvable:$true] %s29_s19 }
   0x4   :  { %s247_s24 = smov 8   ;;  %s248_s25 = smov [#allocation3]  }
   0x5   :  { %35 = dma.hbm_to_vmem [thread:$0]  %s28_s17, 2048, %s30_s19, [#allocation7], %s246_s23, %s246_s23, %s247_s24  }
   0x6   :  { %s19_s26 = sshll.u32 %s248_s25, 4  ;;  %s43_s29 = sshll.u32 %s294_s3, 4  ;;  %s20_s26 = int_to_ptr.vmem [resolvable:$true] %s19_s26  ;;  %s44_s29 = int_to_ptr.hbm [resolvable:$true] %s43_s29 }
   0x7   :  { %22 = dma.hbm_to_vmem [thread:$0]  %s18_s22, 128, %s20_s26, [#allocation4]  }
   0x8   :  { %s249_s1 = smov [#allocation8]  }
   0x9   :  { %s45_s30 = sshll.u32 %s249_s1, 4  ;;  %s46_s30 = int_to_ptr.vmem [resolvable:$true] %s45_s30 }
   0xa   :  { %48 = dma.hbm_to_vmem [thread:$0]  %s44_s29, 128, %s46_s30, [#allocation7]  }
   0xb   :  { %239 = dma.done.wait [#allocation4], 128  }
   0xc   :  { %240 = vsyncadd [#allocation4], 4294967168 }
   0xd   :  { %241 = dma.done.wait [#allocation7], 2176  }
   0xe   :  { %242 = vsyncadd [#allocation7], 4294965120  ;;  %v83_v0 = vld [vmem:[#allocation6 + $0x78] sm:$0xff]  ;;  %v82_v1 = vld [vmem:[#allocation6 + $0x70] sm:$0xff]  ;;  %s250_s5 = smov [#allocation9]   ;;  %s125_s9 = sshll.u32 %s295_s4, 4  ;;  %s126_s9 = int_to_ptr.hbm [resolvable:$true] %s125_s9 }
   0xf   :  { %84 = vmatpush.msra.mxu0 %v83_v0  ;;  %v81_v2 = vld [vmem:[#allocation6 + $0x68] sm:$0xff]  ;;  %v80_v3 = vld [vmem:[#allocation6 + $0x60] sm:$0xff]  ;;  %v79_v4 = vld [vmem:[#allocation6 + $0x58] sm:$0xff]  ;;  %s123_s6 = sshll.u32 %s250_s5, 4  ;;  %s124_s6 = int_to_ptr.vmem [resolvable:$true] %s123_s6 }
  0x10   :  { %v78_v5 = vld [vmem:[#allocation6 + $0x50] sm:$0xff]  ;;  %v77_v6 = vld [vmem:[#allocation6 + $0x48] sm:$0xff]  ;;  %v76_v7 = vld [vmem:[#allocation6 + $0x40] sm:$0xff] }
  0x11   :  { %85 = vmatpush.msra.mxu0 %v82_v1  ;;  %v75_v8 = vld [vmem:[#allocation6 + $0x38] sm:$0xff]  ;;  %v74_v9 = vld [vmem:[#allocation6 + $0x30] sm:$0xff]  ;;  %v73_v10 = vld [vmem:[#allocation6 + $0x28] sm:$0xff] }
  0x12   :  { %v72_v11 = vld [vmem:[#allocation6 + $0x20] sm:$0xff]  ;;  %v71_v12 = vld [vmem:[#allocation6 + $0x18] sm:$0xff]  ;;  %v70_v13 = vld [vmem:[#allocation6 + $0x10] sm:$0xff] }
  0x13   :  { %86 = vmatpush.msra.mxu0 %v81_v2  ;;  %v69_v14 = vld [vmem:[#allocation6 + $0x8] sm:$0xff]  ;;  %v68_v15 = vld [vmem:[#allocation6] sm:$0xff]  ;;  %v67_v16 = vld [vmem:[#allocation3] sm:$0xff] }
  0x14   :  { %v142_v17 = vld [vmem:[%s293_s2] ss:$0 sm:$0xff]  ;;  %v115_v19 = vld [vmem:[#allocation8] sm:$0xff] }
  0x15   :  { %87 = vmatpush.msra.mxu0 %v80_v3 }
  0x17   :  { %88 = vmatpush.msra.mxu0 %v79_v4 }
  0x19   :  { %89 = vmatpush.msra.mxu0 %v78_v5 }
  0x1b   :  { %90 = vmatpush.msra.mxu0 %v77_v6 }
  0x1d   :  { %91 = vmatpush.msra.mxu0 %v76_v7 }
  0x1f   :  { %92 = vmatpush.msra.mxu0 %v75_v8 }
  0x21   :  { %93 = vmatpush.msra.mxu0 %v74_v9 }
  0x23   :  { %94 = vmatpush.msra.mxu0 %v73_v10 }
  0x25   :  { %95 = vmatpush.msra.mxu0 %v72_v11 }
  0x27   :  { %96 = vmatpush.msra.mxu0 %v71_v12 }
  0x29   :  { %97 = vmatpush.msra.mxu0 %v70_v13 }
  0x2b   :  { %98 = vmatpush.msra.mxu0 %v69_v14 }
  0x2d   :  { %99 = vmatpush.msra.mxu0 %v68_v15 }
  0x2e   :  { %100 = vmatmul.f32.vlgmr.msra.gmra.mxu0 %v67_v16 }
  0xab   :  { %v101_v18 = vpop.f32.mrf.mxu0 }
  0xac   :  { %v114_v20 = vadd.f32 %v142_v17, %v101_v18 }
  0xae   :  { %v116_v21 = vadd.f32 %v115_v19, %v114_v20 }
  0xb0   :  { %117 = vst [vmem:[#allocation9] sm:$0xff] %v116_v21 }
  0xb1   :  { %128 = dma.vmem_to_hbm [thread:$0]  %s124_s6, 128, %s126_s9, [#allocation5]  }
  0xb2   :  { %243 = dma.done.wait [#allocation5], 128  }
  0xb3   :  { %244 = vsyncadd [#allocation5], 4294967168 }
  0xb4   :  { %133 = vsyncpa [#allocation4], 1 }
  0xb5   :  { %134 = vsyncpa [#allocation7], 1 }
  0xb6   :  { %135 = vsyncpa [#allocation5], 1 }

</bundles_post_ra>
